<compile_context>
chip_gen: v7x
topology: tpu7x:2x2x1
jax: 0.10.0
libtpu: 0.0.40
codegen_flags: <defaults>
</compile_context>

<pallas_src>
import jax
import jax.numpy as jnp
from jax.experimental import pallas as pl
from jax.experimental.pallas import tpu as pltpu


def _copy_kernel(x_ref, o_ref):
    # Identity copy of the current (block_rows, cols) lane-dense block.
    o_ref[...] = x_ref[...]


# Minimum sublane granularity per element size (packed dtypes pack along
# sublanes: bf16 -> 16 rows per vreg, int8/fp8 -> 32).
_MIN_SUBLANE = {4: 8, 2: 16, 1: 32}


def _pick_cols(total_elems, min_rows):
    """Largest lane-dense width (multiple of 128) dividing the element count,
    preferring widths that also leave >= min_rows rows for full sublane use."""
    fallback = None
    for c in (2048, 1024, 512, 256, 128):
        if total_elems % c == 0:
            if total_elems // c >= min_rows:
                return c
            if fallback is None:
                fallback = c
    return fallback  # None => no 128-lane-dense factorization


def _pick_block_rows(rows, cols, itemsize, min_sublane, target_block_bytes):
    """Block-row count: ~target_block_bytes per block, multiple of the dtype's
    min sublane tile, >= 2 grid steps when possible, evenly dividing `rows`
    when possible so the final block is not ragged/masked."""
    br = target_block_bytes // (cols * itemsize)
    br = max(min_sublane, (br // min_sublane) * min_sublane)
    br = min(br, rows)
    # Keep at least 2 grid steps when the array is big enough (v7x: 2 TCs).
    if rows >= 2 * min_sublane and br > rows // 2:
        br = max(min_sublane, ((rows // 2) // min_sublane) * min_sublane)
    # Prefer a br that evenly divides rows (search downward, multiple of the
    # min sublane tile) before falling back to a ragged cdiv tail.
    if rows % br != 0:
        d = (br // min_sublane) * min_sublane
        while d >= min_sublane:
            if rows % d == 0:
                return d
            d -= min_sublane
    return br


def _materialize_copy(x,
                      *,
                      target_block_bytes=8 * 1024 * 1024,
                      vmem_limit_bytes=48 * 1024 * 1024):
    """Explicit HBM->VMEM->HBM identity copy of `x` (flattened) via Pallas.

    Only used when a materialized copy is explicitly requested; the normal
    reshape path never calls this.
    """
    total = x.size
    itemsize = jnp.dtype(x.dtype).itemsize
    min_sublane = _MIN_SUBLANE.get(itemsize, 8)

    cols = _pick_cols(total, min_sublane)
    if cols is None:
        # No lane-dense layout available — nothing useful to copy through
        # VMEM; reshape is metadata-only anyway.
        return x

    rows = total // cols
    br = _pick_block_rows(rows, cols, itemsize, min_sublane, target_block_bytes)

    x2d = jnp.reshape(x, (rows, cols))
    grid = (pl.cdiv(rows, br),)

    y2d = pl.pallas_call(
        _copy_kernel,
        out_shape=jax.ShapeDtypeStruct((rows, cols), x2d.dtype),
        grid_spec=pltpu.PrefetchScalarGridSpec(
            num_scalar_prefetch=0,
            grid=grid,
            in_specs=[pl.BlockSpec((br, cols), lambda i: (i, 0))],
            out_specs=pl.BlockSpec((br, cols), lambda i: (i, 0)),
        ),
        compiler_params=pltpu.CompilerParams(
            dimension_semantics=("parallel",),
            vmem_limit_bytes=vmem_limit_bytes,
        ),
        cost_estimate=pl.CostEstimate(
            flops=0,
            transcendentals=0,
            bytes_accessed=2 * total * itemsize,
        ),
        # In/out are identical shape+dtype: reuse the input HBM buffer.
        input_output_aliases={0: 0},
    )(x2d)
    return y2d


class Reshape:
    """JAX/Pallas equivalent of the PyTorch Reshape module.

    Default path is metadata-only (free), matching torch .view on a
    contiguous tensor.  Pass force_materialize=True to route the data
    through the Pallas identity-copy kernel.
    """

    def __init__(self, *args, force_materialize=False):
        self.shape = args  # target shape (excluding batch dim)
        self.force_materialize = force_materialize

    def __call__(self, x):
        out_shape = (x.shape[0], *self.shape)
        if self.force_materialize:
            y = _materialize_copy(x)
            return jnp.reshape(y, out_shape)
        # Reshape of a contiguous array is a pure metadata operation:
        # zero HBM traffic, zero kernel time.
        return jnp.reshape(x, out_shape)


if __name__ == "__main__":
    key = jax.random.PRNGKey(0)
    # Small NCHW input: batch=2, channels=4, spatial=16x16
    x = jax.random.normal(key, (2, 4, 16, 16), dtype=jnp.float32)

    # Reference (== torch .view semantics on contiguous input).
    ref = jnp.reshape(x, (x.shape[0], 64, 16))

    # 1) Default (metadata-only) path — the recommended production path.
    module = Reshape(64, 16)
    y = jax.block_until_ready(module(x))
    assert y.shape == (2, 64, 16), y.shape
    assert y.dtype == x.dtype
    assert bool(jnp.array_equal(y, ref))

    # 2) Forced-materialization path — exercises the Pallas copy kernel once.
    module_mat = Reshape(64, 16, force_materialize=True)
    y_mat = jax.block_until_ready(module_mat(x))
    assert y_mat.shape == (2, 64, 16), y_mat.shape
    assert y_mat.dtype == x.dtype
    assert bool(jnp.array_equal(y_mat, ref))

    print("KERNEL_OK")
</pallas_src>

<mosaic_0001>
module attributes {stable_mosaic.version = 11 : i64} {
  func.func @_copy_kernel(%arg0: i32, %arg1: memref<8x256xf32, #tpu.memory_space<vmem>>, %arg2: memref<8x256xf32, #tpu.memory_space<vmem>>) attributes {dimension_semantics = [#tpu.dimension_semantics<parallel>], iteration_bounds = array<i64: 1>, scalar_prefetch = 0 : i64, scratch_operands = 0 : i64, tpu.core_type = #tpu.core_type<tc>, window_params = [{transform_indices = @transform_0, window_bounds = array<i64: 8, 256>}, {transform_indices = @transform_1, window_bounds = array<i64: 8, 256>}]} {
    %c0 = arith.constant 0 : index
    %c0_0 = arith.constant 0 : index
    %0 = vector.load %arg1[%c0, %c0_0] : memref<8x256xf32, #tpu.memory_space<vmem>>, vector<8x256xf32>
    %c0_1 = arith.constant 0 : index
    %c0_2 = arith.constant 0 : index
    %1 = vector.load %arg2[%c0_1, %c0_2] : memref<8x256xf32, #tpu.memory_space<vmem>>, vector<8x256xf32>
    tpu.vector_store %arg2[%c0_1, %c0_2], %0 {strides = array<i32>} : memref<8x256xf32, #tpu.memory_space<vmem>>, vector<8x256xf32>,
    return
  }
  func.func @transform_0(%arg0: i32) -> (i32, i32) {
    %c0_i32 = arith.constant 0 : i32
    %c0_i32_0 = arith.constant 0 : i32
    return %arg0, %c0_i32 : i32, i32
  }
  func.func @transform_1(%arg0: i32) -> (i32, i32) {
    %c0_i32 = arith.constant 0 : i32
    %c0_i32_0 = arith.constant 0 : i32
    return %arg0, %c0_i32 : i32, i32
  }
}

</mosaic_0001>

<bundles_post_ra>
// kernel: tpu_custom_call.1
= control target key start
LH: loop header
LB: loop body
LE: loop exit
PB: predicated region body
PF: predicated region fallthrough
CT: control target
= control target key end

     0   :  { %6 = vsyncpa [#allocation3], 0  ;;  %s126_s0 = inlined_call_operand.hbm [shape: f32[8,256], index: 0, kind: input, shape index: {}, may-alias: {0,1}]   ;;  %s127_s1 = inlined_call_operand.hbm [shape: f32[8,256], index: 1, kind: output, shape index: {}, may-alias: {0,1}]  }
   0x1   :  { %7 = vsyncpa [#allocation4], 0  ;;  %s90_s6 = smov [#allocation2]   ;;  %s42_s10 = scalar_lea.hbm %s126_s0, 256 }
   0x2   :  { %s14_s7 = sshll.u32 %s90_s6, 4  ;;  %p43_p0 = scmp.ne.s32.totalorder %s126_s0, %s42_s10  ;;  %s15_s7 = int_to_ptr.vmem [resolvable:$true] %s14_s7 }
   0x3   :  { %p46_p1 = scmp.lt.u32.totalorder %s42_s10, %s126_s0 }
   0x5   :  { %p48_p2 = pnand %p46_p1, %p43_p0 }
   0x7   :  { %51 = shalt.err (!%p48_p2)
}
   0x8   :  { %s52_s15 = scalar_lea.vmem %s15_s7, 256  ;;  %p57_p4 = scmp.lt.s32.totalorder %s15_s7, %s15_s7 }
   0x9   :  { %p53_p3 = scmp.ne.s32.totalorder %s15_s7, %s52_s15  ;;  %p58_p5 = scmp.lt.s32.totalorder %s52_s15, %s52_s15 }
   0xb   :  { %p59_p6 = por %p58_p5, %p57_p4 }
   0xd   :  { %p60_p7 = pnand %p59_p6, %p53_p3 }
   0xf   :  { %63 = shalt.err (!%p60_p7)
}
  0x10   :  { %17 = dma.hbm_to_vmem [thread:$0]  %s126_s0, 256, %s15_s7, [#allocation3]  }
  0x11   :  { %86 = dma.done.wait [#allocation3], 256  }
  0x12   :  { %87 = vsyncadd [#allocation3], 4294967040  ;;  %s91_s18 = smov [#allocation5]   ;;  %v21_v0 = vld [vmem:[#allocation2] sm:$0xff]  ;;  %v22_v1 = vld [vmem:[#allocation2 + $0x8] sm:$0xff] }
  0x13   :  { %s31_s19 = sshll.u32 %s91_s18, 4  ;;  %23 = vst [vmem:[#allocation5] sm:$0xff] %v21_v0  ;;  %24 = vst [vmem:[#allocation5 + $0x8] sm:$0xff] %v22_v1  ;;  %s32_s19 = int_to_ptr.vmem [resolvable:$true] %s31_s19 }
  0x14   :  { %s64_s20 = scalar_lea.vmem %s32_s19, 256  ;;  %p69_p9 = scmp.lt.s32.totalorder %s32_s19, %s32_s19 }
  0x15   :  { %p65_p8 = scmp.ne.s32.totalorder %s32_s19, %s64_s20  ;;  %p70_p10 = scmp.lt.s32.totalorder %s64_s20, %s64_s20 }
  0x17   :  { %p71_p11 = por %p70_p10, %p69_p9 }
  0x19   :  { %p72_p12 = pnand %p71_p11, %p65_p8 }
  0x1b   :  { %75 = shalt.err (!%p72_p12)
}
  0x1c   :  { %s76_s0 = scalar_lea.hbm %s127_s1, 256 }
  0x1d   :  { %p77_p13 = scmp.ne.s32.totalorder %s127_s1, %s76_s0  ;;  %p80_p0 = scmp.lt.u32.totalorder %s76_s0, %s127_s1 }
  0x1f   :  { %p82_p1 = pnand %p80_p0, %p77_p13 }
  0x21   :  { %85 = shalt.err (!%p82_p1)
}
  0x22   :  { %34 = dma.vmem_to_hbm [thread:$0]  %s32_s19, 256, %s127_s1, [#allocation4]  }
  0x23   :  { %88 = dma.done.wait [#allocation4], 256  }
  0x24   :  { %89 = vsyncadd [#allocation4], 4294967040 }
  0x25   :  { %38 = vsyncpa [#allocation3], 1 }
  0x26   :  { %39 = vsyncpa [#allocation4], 1 }

</bundles_post_ra>
